<compile_context>
chip_gen: v7x
topology: tpu7x:2x2x1
jax: 0.10.0
libtpu: 0.0.40
codegen_flags: <defaults>
</compile_context>

<pallas_src>
import functools

import jax
import jax.numpy as jnp
from jax.experimental import pallas as pl
from jax.experimental.pallas import tpu as pltpu

BN_EPS = 1e-5
LANE = 128


def _round_up(x, m):
    return (x + m - 1) // m * m


def _pick_vmem_limit():
    """Per-generation VMEM limit: ~100 MiB on 128-MiB parts (v5e/v6e), 48 MiB on
    v7x (64 MiB physical per TensorCore). Conservative fallback if query fails."""
    try:
        phys = pltpu.get_tpu_info().vmem_capacity_bytes
    except Exception:  # any failure -> conservative default that works everywhere
        return 48 * 1024 * 1024
    if phys >= 120 * 1024 * 1024:
        return 100 * 1024 * 1024
    return 48 * 1024 * 1024


VMEM_LIMIT = _pick_vmem_limit()
# Row caps: rows = tile_h*W of the 128-lane f32 accumulator / bf16 conv block.
PASS1_ROWS_CAP = 16384 if VMEM_LIMIT > 64 * 1024 * 1024 else 8192
PASS2_ROWS_CAP = 8192


def _pick_tile_h(H, W, rows_cap):
    """Largest divisor tile_h of H with tile_h*W <= rows_cap and tile_h*W % 8 == 0."""
    for th in range(H, 0, -1):
        if H % th == 0 and th * W <= rows_cap and (th * W) % 8 == 0:
            return th
    return H  # whole image: block == full array dims, always a legal BlockSpec


def _pick_tile_hw(HW, cap):
    """Largest divisor of HW that is a multiple of 128 and <= cap; else whole HW."""
    t = min(cap, HW)
    t -= t % LANE
    while t >= LANE:
        if HW % t == 0:
            return t
        t -= LANE
    return HW


# ------------- pass 1: conv (3 K-folded matmuls) + BN partial stats -------------
def _conv_stats_kernel(xs_ref, w_ref, conv_ref, psum_ref, psq_ref, acc_ref,
                       *, W, tile_rows, aligned):
    """Grid step = (image n, row-tile t of tile_h output rows).

    xs_ref:   (1, (H+2)*W, 3*Cin) bf16  padded image n, width taps folded into
                                        channels; resident across the t axis
    w_ref:    (3, 3*Cin, Cout_pad) bf16 one weight matrix per kernel row (K=3*Cin)
    conv_ref: (1, tile_rows, Cout_pad) bf16  pre-BN conv output block
    psum_ref: (1, 1, Cout_pad) f32      per-(n,t) per-channel sum
    psq_ref:  (1, 1, Cout_pad) f32      per-(n,t) per-channel sum of squares
    acc_ref:  (tile_rows, Cout_pad) f32 VMEM scratch accumulator
    """
    t = pl.program_id(1)
    base = t * tile_rows
    for dy in range(3):
        # rows [base + dy*W, base + dy*W + tile_rows) give, at local row y*W + x,
        # padded input pixel (t*tile_h + y + dy, x..x+2) with its 3*Cin tap channels.
        start = base + dy * W
        if aligned:
            start = pl.multiple_of(start, 8)
        win = xs_ref[0, pl.ds(start, tile_rows), :]
        part = jnp.dot(win, w_ref[dy], preferred_element_type=jnp.float32)
        if dy == 0:
            acc_ref[...] = part
        else:
            acc_ref[...] += part
    acc = acc_ref[...]
    conv_ref[0] = acc.astype(conv_ref.dtype)          # bf16 intermediate
    psum_ref[0] = jnp.sum(acc, axis=0, keepdims=True)  # stats from f32 accumulator
    psq_ref[0] = jnp.sum(acc * acc, axis=0, keepdims=True)


# ------- pass 2: BN affine + ReLU + channel un-pad + HWC->CHW transpose -------
def _bn_relu_kernel(conv_ref, scale_ref, shift_ref, o_ref, *, cout):
    """conv_ref: (1, tile_hw, Cout_pad) bf16; scale/shift: (1, Cout_pad) f32
    o_ref: (1, Cout, tile_hw) f32  -- final NCHW layout, lane-dense over H*W."""
    y = conv_ref[0].astype(jnp.float32) * scale_ref[...] + shift_ref[...]
    y = jnp.maximum(y, 0.0)                 # (tile_hw, Cout_pad)
    o_ref[0] = jnp.transpose(y)[:cout, :]   # XLU transpose rides a free slot


@jax.jit
def conv_block_forward(x_nchw, w_oihw, b, gamma, beta):
    """ConvBlock forward. x_nchw: (N, Cin, H, W) f32 -> (N, Cout, H, W) f32."""
    del b  # per-channel conv bias is cancelled exactly by training-mode BN

    N, Cin, H, W = x_nchw.shape
    Cout = w_oihw.shape[0]
    assert w_oihw.shape[1:] == (Cin, 3, 3)
    HW = H * W
    M = N * HW
    Cout_pad = _round_up(Cout, LANE)
    K = 3 * Cin

    # ---- layout glue: NHWC, pad, fold the 3 width taps into channels, bf16 ----
    x = jnp.transpose(x_nchw, (0, 2, 3, 1))                       # NHWC
    xp = jnp.pad(x, ((0, 0), (1, 1), (1, 1), (0, 0)))             # (N, H+2, W+2, Cin)
    xs = jnp.concatenate([xp[:, :, dx:dx + W, :] for dx in range(3)], axis=-1)
    xs = xs.reshape(N, (H + 2) * W, K).astype(jnp.bfloat16)       # (N, (H+2)W, 3Cin)

    # weights: (Cout, Cin, 3, 3) -> (3, 3*Cin, Cout_pad); K index = dx*Cin + c
    w_r = jnp.transpose(w_oihw, (2, 3, 1, 0)).reshape(3, K, Cout)
    w_pad = jnp.zeros((3, K, Cout_pad), jnp.float32).at[:, :, :Cout].set(w_r)
    w_pad = w_pad.astype(jnp.bfloat16)

    tile_h = _pick_tile_h(H, W, PASS1_ROWS_CAP)
    T = H // tile_h
    tile_rows = tile_h * W
    aligned = (W % 8 == 0) and (tile_rows % 8 == 0)

    # ---- pass 1: conv + per-(image, row-tile) BN partial stats ----
    kernel1 = functools.partial(_conv_stats_kernel, W=W, tile_rows=tile_rows,
                                aligned=aligned)
    flops1 = 2 * M * 9 * Cin * Cout_pad
    bytes1 = xs.size * 2 + w_pad.size * 2 + M * Cout_pad * 2 + 2 * N * T * Cout_pad * 4
    conv_out, psum, psq = pl.pallas_call(
        kernel1,
        grid=(N, T),
        in_specs=[
            pl.BlockSpec((1, (H + 2) * W, K), lambda n, t: (n, 0, 0)),
            pl.BlockSpec((3, K, Cout_pad), lambda n, t: (0, 0, 0)),
        ],
        out_specs=[
            pl.BlockSpec((1, tile_rows, Cout_pad), lambda n, t: (n, t, 0)),
            pl.BlockSpec((1, 1, Cout_pad), lambda n, t: (n * T + t, 0, 0)),
            pl.BlockSpec((1, 1, Cout_pad), lambda n, t: (n * T + t, 0, 0)),
        ],
        out_shape=[
            jax.ShapeDtypeStruct((N, HW, Cout_pad), jnp.bfloat16),
            jax.ShapeDtypeStruct((N * T, 1, Cout_pad), jnp.float32),
            jax.ShapeDtypeStruct((N * T, 1, Cout_pad), jnp.float32),
        ],
        scratch_shapes=[pltpu.VMEM((tile_rows, Cout_pad), jnp.float32)],
        compiler_params=pltpu.CompilerParams(
            dimension_semantics=("parallel", "parallel"),
            vmem_limit_bytes=VMEM_LIMIT,
        ),
        cost_estimate=pl.CostEstimate(
            flops=flops1, transcendentals=0, bytes_accessed=bytes1),
    )(xs, w_pad)

    # ---- tiny global reduction + affine folding (XLA, (1, Cout_pad) vectors) ----
    mean = jnp.sum(psum, axis=0) / M                      # (1, Cout_pad)
    ex2 = jnp.sum(psq, axis=0) / M
    var = jnp.maximum(ex2 - mean * mean, 0.0)             # biased var (training BN)
    inv_std = jax.lax.rsqrt(var + BN_EPS)
    gamma_pad = jnp.zeros((1, Cout_pad), jnp.float32).at[0, :Cout].set(gamma)
    beta_pad = jnp.zeros((1, Cout_pad), jnp.float32).at[0, :Cout].set(beta)
    scale = gamma_pad * inv_std
    shift = beta_pad - mean * scale

    # ---- pass 2: fused (scale*x + shift) + ReLU + un-pad + transpose to NCHW ----
    tile_hw = _pick_tile_hw(HW, PASS2_ROWS_CAP)
    T2 = HW // tile_hw
    kernel2 = functools.partial(_bn_relu_kernel, cout=Cout)
    flops2 = 3 * M * Cout_pad
    bytes2 = M * Cout_pad * 2 + M * Cout * 4 + 2 * Cout_pad * 4
    out = pl.pallas_call(
        kernel2,
        grid=(N, T2),
        in_specs=[
            pl.BlockSpec((1, tile_hw, Cout_pad), lambda n, t: (n, t, 0)),
            pl.BlockSpec((1, Cout_pad), lambda n, t: (0, 0)),
            pl.BlockSpec((1, Cout_pad), lambda n, t: (0, 0)),
        ],
        out_specs=pl.BlockSpec((1, Cout, tile_hw), lambda n, t: (n, 0, t)),
        out_shape=jax.ShapeDtypeStruct((N, Cout, HW), jnp.float32),
        compiler_params=pltpu.CompilerParams(
            dimension_semantics=("parallel", "parallel"),
            vmem_limit_bytes=VMEM_LIMIT,
        ),
        cost_estimate=pl.CostEstimate(
            flops=flops2, transcendentals=0, bytes_accessed=bytes2),
    )(conv_out, scale, shift)

    return out.reshape(N, Cout, H, W)   # free reshape (contiguous split of last dim)


if __name__ == "__main__":
    key = jax.random.PRNGKey(0)
    k_x, k_w, k_b = jax.random.split(key, 3)

    N, Cin, H, W = 2, 4, 16, 16
    Cout, Kk = 8, 3

    x = jax.random.normal(k_x, (N, Cin, H, W), dtype=jnp.float32)

    # deterministic parameter init (PyTorch Conv2d-style uniform bound; BN: gamma=1, beta=0)
    fan_in = Cin * Kk * Kk
    bound = 1.0 / (fan_in ** 0.5)
    w = jax.random.uniform(k_w, (Cout, Cin, Kk, Kk), jnp.float32, -bound, bound)
    b = jax.random.uniform(k_b, (Cout,), jnp.float32, -bound, bound)
    gamma = jnp.ones((Cout,), jnp.float32)
    beta = jnp.zeros((Cout,), jnp.float32)

    y = conv_block_forward(x, w, b, gamma, beta)
    y = jax.block_until_ready(y)
    assert y.shape == (N, Cout, H, W)

    # correctness check vs f32 reference (bf16 MXU operands + bf16 intermediate -> loose tol)
    conv_ref = jax.lax.conv_general_dilated(
        x, w, window_strides=(1, 1), padding=((1, 1), (1, 1)),
        dimension_numbers=("NCHW", "OIHW", "NCHW")) + b[None, :, None, None]
    mean_r = conv_ref.mean(axis=(0, 2, 3), keepdims=True)
    var_r = conv_ref.var(axis=(0, 2, 3), keepdims=True)
    ref = jnp.maximum(
        (conv_ref - mean_r) * jax.lax.rsqrt(var_r + BN_EPS)
        * gamma[None, :, None, None] + beta[None, :, None, None], 0.0)
    err = float(jnp.max(jnp.abs(y - ref)))
    assert err < 5e-2, f"max abs error {err}"

    print("KERNEL_OK")
</pallas_src>

<mosaic_0001>
module attributes {stable_mosaic.version = 11 : i64} {
  func.func @_bn_relu_kernel(%arg0: i32, %arg1: i32, %arg2: memref<1x256x128xbf16, #tpu.memory_space<vmem>>, %arg3: memref<1x128xf32, #tpu.memory_space<vmem>>, %arg4: memref<1x128xf32, #tpu.memory_space<vmem>>, %arg5: memref<1x8x256xf32, #tpu.memory_space<vmem>>) attributes {dimension_semantics = [#tpu.dimension_semantics<parallel>, #tpu.dimension_semantics<parallel>], iteration_bounds = array<i64: 2, 1>, scalar_prefetch = 0 : i64, scratch_operands = 0 : i64, tpu.core_type = #tpu.core_type<tc>, window_params = [{transform_indices = @transform_0, window_bounds = array<i64: 1, 256, 128>}, {pipeline_mode = #tpu.pipeline_mode<synchronous>, transform_indices = @transform_1, window_bounds = array<i64: 1, 128>}, {pipeline_mode = #tpu.pipeline_mode<synchronous>, transform_indices = @transform_2, window_bounds = array<i64: 1, 128>}, {transform_indices = @transform_3, window_bounds = array<i64: 1, 8, 256>}]} {
    %c0 = arith.constant 0 : index
    %c0_0 = arith.constant 0 : index
    %c0_1 = arith.constant 0 : index
    %0 = vector.load %arg2[%c0, %c0_0, %c0_1] : memref<1x256x128xbf16, #tpu.memory_space<vmem>>, vector<1x256x128xbf16>
    %1 = vector.shape_cast %0 : vector<1x256x128xbf16> to vector<256x128xbf16>
    %2 = arith.extf %1 : vector<256x128xbf16> to vector<256x128xf32>
    %c0_2 = arith.constant 0 : index
    %c0_3 = arith.constant 0 : index
    %3 = vector.load %arg3[%c0_2, %c0_3] : memref<1x128xf32, #tpu.memory_space<vmem>>, vector<1x128xf32>
    %4 = vector.broadcast %3 : vector<1x128xf32> to vector<256x128xf32>
    %5 = arith.mulf %2, %4 : vector<256x128xf32>
    %c0_4 = arith.constant 0 : index
    %c0_5 = arith.constant 0 : index
    %6 = vector.load %arg4[%c0_4, %c0_5] : memref<1x128xf32, #tpu.memory_space<vmem>>, vector<1x128xf32>
    %7 = vector.broadcast %6 : vector<1x128xf32> to vector<256x128xf32>
    %8 = arith.addf %5, %7 : vector<256x128xf32>
    %cst = arith.constant 0.000000e+00 : f32
    %9 = vector.broadcast %cst : f32 to vector<256x128xf32>
    %10 = arith.maximumf %8, %9 : vector<256x128xf32>
    %11 = tpu.transpose %10, [1, 0] : vector<256x128xf32> -> vector<128x256xf32>
    %12 = vector.extract_strided_slice %11 {offsets = [0, 0], sizes = [8, 256], strides = [1, 1]} : vector<128x256xf32> to vector<8x256xf32>
    %c0_6 = arith.constant 0 : index
    %c0_7 = arith.constant 0 : index
    %c0_8 = arith.constant 0 : index
    %13 = vector.load %arg5[%c0_6, %c0_7, %c0_8] : memref<1x8x256xf32, #tpu.memory_space<vmem>>, vector<1x8x256xf32>
    %14 = vector.shape_cast %13 : vector<1x8x256xf32> to vector<8x256xf32>
    %15 = vector.shape_cast %12 : vector<8x256xf32> to vector<1x8x256xf32>
    tpu.vector_store %arg5[%c0_6, %c0_7, %c0_8], %15 {strides = array<i32>} : memref<1x8x256xf32, #tpu.memory_space<vmem>>, vector<1x8x256xf32>,
    return
  }
  func.func @transform_0(%arg0: i32, %arg1: i32) -> (i32, i32, i32) {
    %c0_i32 = arith.constant 0 : i32
    %c0_i32_0 = arith.constant 0 : i32
    return %arg0, %arg1, %c0_i32 : i32, i32, i32
  }
  func.func @transform_1(%arg0: i32, %arg1: i32) -> (i32, i32) {
    %c0_i32 = arith.constant 0 : i32
    %c0_i32_0 = arith.constant 0 : i32
    %c0_i32_1 = arith.constant 0 : i32
    return %c0_i32, %c0_i32_0 : i32, i32
  }
  func.func @transform_2(%arg0: i32, %arg1: i32) -> (i32, i32) {
    %c0_i32 = arith.constant 0 : i32
    %c0_i32_0 = arith.constant 0 : i32
    %c0_i32_1 = arith.constant 0 : i32
    return %c0_i32, %c0_i32_0 : i32, i32
  }
  func.func @transform_3(%arg0: i32, %arg1: i32) -> (i32, i32, i32) {
    %c0_i32 = arith.constant 0 : i32
    %c0_i32_0 = arith.constant 0 : i32
    return %arg0, %c0_i32, %arg1 : i32, i32, i32
  }
}

module attributes {stable_mosaic.version = 11 : i64} {
  func.func @_conv_stats_kernel(%arg0: i32, %arg1: i32, %arg2: memref<1x288x12xbf16, #tpu.memory_space<vmem>>, %arg3: memref<3x12x128xbf16, #tpu.memory_space<vmem>>, %arg4: memref<1x256x128xbf16, #tpu.memory_space<vmem>>, %arg5: memref<1x1x128xf32, #tpu.memory_space<vmem>>, %arg6: memref<1x1x128xf32, #tpu.memory_space<vmem>>, %arg7: memref<256x128xf32, #tpu.memory_space<vmem>>) attributes {dimension_semantics = [#tpu.dimension_semantics<parallel>, #tpu.dimension_semantics<parallel>], iteration_bounds = array<i64: 2, 1>, scalar_prefetch = 0 : i64, scratch_operands = 1 : i64, tpu.core_type = #tpu.core_type<tc>, window_params = [{transform_indices = @transform_0, window_bounds = array<i64: 1, 288, 12>}, {pipeline_mode = #tpu.pipeline_mode<synchronous>, transform_indices = @transform_1, window_bounds = array<i64: 3, 12, 128>}, {transform_indices = @transform_2, window_bounds = array<i64: 1, 256, 128>}, {transform_indices = @transform_3, window_bounds = array<i64: 1, 1, 128>}, {transform_indices = @transform_4, window_bounds = array<i64: 1, 1, 128>}]} {
    %c256_i32 = arith.constant 256 : i32
    %0 = arith.muli %arg1, %c256_i32 : i32
    %c0_i32 = arith.constant 0 : i32
    %1 = arith.addi %0, %c0_i32 : i32
    %2 = tpu.assume_multiple %1, 8 : i32
    %c0 = arith.constant 0 : index
    %3 = arith.index_cast %2 : i32 to index
    %c0_0 = arith.constant 0 : index
    %4 = vector.load %arg2[%c0, %3, %c0_0] : memref<1x288x12xbf16, #tpu.memory_space<vmem>>, vector<1x256x12xbf16>
    %5 = vector.shape_cast %4 : vector<1x256x12xbf16> to vector<256x12xbf16>
    %c0_1 = arith.constant 0 : index
    %c0_2 = arith.constant 0 : index
    %c0_3 = arith.constant 0 : index
    %6 = vector.load %arg3[%c0_1, %c0_2, %c0_3] : memref<3x12x128xbf16, #tpu.memory_space<vmem>>, vector<1x12x128xbf16>
    %7 = vector.shape_cast %6 : vector<1x12x128xbf16> to vector<12x128xbf16>
    %cst = arith.constant dense<0.000000e+00> : vector<256x128xf32>
    %8 = tpu.matmul %5, %7, %cst {dimension_numbers = #tpu.dot_dimension_numbers<[1], [0], [0], [1], [0, 0, 1, 1], [], []>} : vector<256x12xbf16>, vector<12x128xbf16>, vector<256x128xf32> -> vector<256x128xf32>
    %c0_4 = arith.constant 0 : index
    %c0_5 = arith.constant 0 : index
    %9 = vector.load %arg7[%c0_4, %c0_5] : memref<256x128xf32, #tpu.memory_space<vmem>>, vector<256x128xf32>
    tpu.vector_store %arg7[%c0_4, %c0_5], %8 {strides = array<i32>} : memref<256x128xf32, #tpu.memory_space<vmem>>, vector<256x128xf32>,
    %c16_i32 = arith.constant 16 : i32
    %10 = arith.addi %0, %c16_i32 : i32
    %11 = tpu.assume_multiple %10, 8 : i32
    %c0_6 = arith.constant 0 : index
    %12 = arith.index_cast %11 : i32 to index
    %c0_7 = arith.constant 0 : index
    %13 = vector.load %arg2[%c0_6, %12, %c0_7] : memref<1x288x12xbf16, #tpu.memory_space<vmem>>, vector<1x256x12xbf16>
    %14 = vector.shape_cast %13 : vector<1x256x12xbf16> to vector<256x12xbf16>
    %c1 = arith.constant 1 : index
    %c0_8 = arith.constant 0 : index
    %c0_9 = arith.constant 0 : index
    %15 = vector.load %arg3[%c1, %c0_8, %c0_9] : memref<3x12x128xbf16, #tpu.memory_space<vmem>>, vector<1x12x128xbf16>
    %16 = vector.shape_cast %15 : vector<1x12x128xbf16> to vector<12x128xbf16>
    %cst_10 = arith.constant dense<0.000000e+00> : vector<256x128xf32>
    %17 = tpu.matmul %14, %16, %cst_10 {dimension_numbers = #tpu.dot_dimension_numbers<[1], [0], [0], [1], [0, 0, 1, 1], [], []>} : vector<256x12xbf16>, vector<12x128xbf16>, vector<256x128xf32> -> vector<256x128xf32>
    %c0_11 = arith.constant 0 : index
    %c0_12 = arith.constant 0 : index
    %18 = vector.load %arg7[%c0_11, %c0_12] : memref<256x128xf32, #tpu.memory_space<vmem>>, vector<256x128xf32>
    %19 = arith.addf %18, %17 : vector<256x128xf32>
    %c0_13 = arith.constant 0 : index
    %c0_14 = arith.constant 0 : index
    %20 = vector.load %arg7[%c0_13, %c0_14] : memref<256x128xf32, #tpu.memory_space<vmem>>, vector<256x128xf32>
    tpu.vector_store %arg7[%c0_13, %c0_14], %19 {strides = array<i32>} : memref<256x128xf32, #tpu.memory_space<vmem>>, vector<256x128xf32>,
    %c32_i32 = arith.constant 32 : i32
    %21 = arith.addi %0, %c32_i32 : i32
    %22 = tpu.assume_multiple %21, 8 : i32
    %c0_15 = arith.constant 0 : index
    %23 = arith.index_cast %22 : i32 to index
    %c0_16 = arith.constant 0 : index
    %24 = vector.load %arg2[%c0_15, %23, %c0_16] : memref<1x288x12xbf16, #tpu.memory_space<vmem>>, vector<1x256x12xbf16>
    %25 = vector.shape_cast %24 : vector<1x256x12xbf16> to vector<256x12xbf16>
    %c2 = arith.constant 2 : index
    %c0_17 = arith.constant 0 : index
    %c0_18 = arith.constant 0 : index
    %26 = vector.load %arg3[%c2, %c0_17, %c0_18] : memref<3x12x128xbf16, #tpu.memory_space<vmem>>, vector<1x12x128xbf16>
    %27 = vector.shape_cast %26 : vector<1x12x128xbf16> to vector<12x128xbf16>
    %cst_19 = arith.constant dense<0.000000e+00> : vector<256x128xf32>
    %28 = tpu.matmul %25, %27, %cst_19 {dimension_numbers = #tpu.dot_dimension_numbers<[1], [0], [0], [1], [0, 0, 1, 1], [], []>} : vector<256x12xbf16>, vector<12x128xbf16>, vector<256x128xf32> -> vector<256x128xf32>
    %c0_20 = arith.constant 0 : index
    %c0_21 = arith.constant 0 : index
    %29 = vector.load %arg7[%c0_20, %c0_21] : memref<256x128xf32, #tpu.memory_space<vmem>>, vector<256x128xf32>
    %30 = arith.addf %29, %28 : vector<256x128xf32>
    %c0_22 = arith.constant 0 : index
    %c0_23 = arith.constant 0 : index
    %31 = vector.load %arg7[%c0_22, %c0_23] : memref<256x128xf32, #tpu.memory_space<vmem>>, vector<256x128xf32>
    tpu.vector_store %arg7[%c0_22, %c0_23], %30 {strides = array<i32>} : memref<256x128xf32, #tpu.memory_space<vmem>>, vector<256x128xf32>,
    %c0_24 = arith.constant 0 : index
    %c0_25 = arith.constant 0 : index
    %32 = vector.load %arg7[%c0_24, %c0_25] : memref<256x128xf32, #tpu.memory_space<vmem>>, vector<256x128xf32>
    %33 = arith.truncf %32 : vector<256x128xf32> to vector<256x128xbf16>
    %c0_26 = arith.constant 0 : index
    %c0_27 = arith.constant 0 : index
    %c0_28 = arith.constant 0 : index
    %34 = vector.load %arg4[%c0_26, %c0_27, %c0_28] : memref<1x256x128xbf16, #tpu.memory_space<vmem>>, vector<1x256x128xbf16>
    %35 = vector.shape_cast %34 : vector<1x256x128xbf16> to vector<256x128xbf16>
    %36 = vector.shape_cast %33 : vector<256x128xbf16> to vector<1x256x128xbf16>
    tpu.vector_store %arg4[%c0_26, %c0_27, %c0_28], %36 {strides = array<i32>} : memref<1x256x128xbf16, #tpu.memory_space<vmem>>, vector<1x256x128xbf16>,
    %cst_29 = arith.constant dense<0.000000e+00> : vector<128xf32>
    %37 = vector.multi_reduction <add>, %32, %cst_29 [0] : vector<256x128xf32> to vector<128xf32>
    %38 = vector.shape_cast %37 : vector<128xf32> to vector<1x128xf32>
    %c0_30 = arith.constant 0 : index
    %c0_31 = arith.constant 0 : index
    %c0_32 = arith.constant 0 : index
    %39 = vector.load %arg5[%c0_30, %c0_31, %c0_32] : memref<1x1x128xf32, #tpu.memory_space<vmem>>, vector<1x1x128xf32>
    %40 = vector.shape_cast %39 : vector<1x1x128xf32> to vector<1x128xf32>
    %41 = vector.shape_cast %38 : vector<1x128xf32> to vector<1x1x128xf32>
    tpu.vector_store %arg5[%c0_30, %c0_31, %c0_32], %41 {strides = array<i32>} : memref<1x1x128xf32, #tpu.memory_space<vmem>>, vector<1x1x128xf32>,
    %42 = arith.mulf %32, %32 : vector<256x128xf32>
    %cst_33 = arith.constant dense<0.000000e+00> : vector<128xf32>
    %43 = vector.multi_reduction <add>, %42, %cst_33 [0] : vector<256x128xf32> to vector<128xf32>
    %44 = vector.shape_cast %43 : vector<128xf32> to vector<1x128xf32>
    %c0_34 = arith.constant 0 : index
    %c0_35 = arith.constant 0 : index
    %c0_36 = arith.constant 0 : index
    %45 = vector.load %arg6[%c0_34, %c0_35, %c0_36] : memref<1x1x128xf32, #tpu.memory_space<vmem>>, vector<1x1x128xf32>
    %46 = vector.shape_cast %45 : vector<1x1x128xf32> to vector<1x128xf32>
    %47 = vector.shape_cast %44 : vector<1x128xf32> to vector<1x1x128xf32>
    tpu.vector_store %arg6[%c0_34, %c0_35, %c0_36], %47 {strides = array<i32>} : memref<1x1x128xf32, #tpu.memory_space<vmem>>, vector<1x1x128xf32>,
    return
  }
  func.func @transform_0(%arg0: i32, %arg1: i32) -> (i32, i32, i32) {
    %c0_i32 = arith.constant 0 : i32
    %c0_i32_0 = arith.constant 0 : i32
    %c0_i32_1 = arith.constant 0 : i32
    return %arg0, %c0_i32, %c0_i32_0 : i32, i32, i32
  }
  func.func @transform_1(%arg0: i32, %arg1: i32) -> (i32, i32, i32) {
    %c0_i32 = arith.constant 0 : i32
    %c0_i32_0 = arith.constant 0 : i32
    %c0_i32_1 = arith.constant 0 : i32
    %c0_i32_2 = arith.constant 0 : i32
    return %c0_i32, %c0_i32_0, %c0_i32_1 : i32, i32, i32
  }
  func.func @transform_2(%arg0: i32, %arg1: i32) -> (i32, i32, i32) {
    %c0_i32 = arith.constant 0 : i32
    %c0_i32_0 = arith.constant 0 : i32
    return %arg0, %arg1, %c0_i32 : i32, i32, i32
  }
  func.func @transform_3(%arg0: i32, %arg1: i32) -> (i32, i32, i32) {
    %c1_i32 = arith.constant 1 : i32
    %0 = arith.muli %arg0, %c1_i32 : i32
    %1 = arith.addi %0, %arg1 : i32
    %c0_i32 = arith.constant 0 : i32
    %c0_i32_0 = arith.constant 0 : i32
    %c0_i32_1 = arith.constant 0 : i32
    return %1, %c0_i32, %c0_i32_0 : i32, i32, i32
  }
  func.func @transform_4(%arg0: i32, %arg1: i32) -> (i32, i32, i32) {
    %c1_i32 = arith.constant 1 : i32
    %0 = arith.muli %arg0, %c1_i32 : i32
    %1 = arith.addi %0, %arg1 : i32
    %c0_i32 = arith.constant 0 : i32
    %c0_i32_0 = arith.constant 0 : i32
    %c0_i32_1 = arith.constant 0 : i32
    return %1, %c0_i32, %c0_i32_0 : i32, i32, i32
  }
}

</mosaic_0001>

<bundles_post_ra>
// kernel: conv_block_forward.3
= control target key start
LH: loop header
LB: loop body
LE: loop exit
PB: predicated region body
PF: predicated region fallthrough
CT: control target
= control target key end

     0   :  { %s699_s12 = smov 0   ;;  %s701_s13 = smov 0   ;;  %s828_s0 = inlined_call_operand.vmem [shape: bf16[2,256,128], index: 0, kind: input, shape index: {}]   ;;  %s829_s1 = inlined_call_operand.vmem [shape: f32[1,128], index: 1, kind: input, shape index: {}]   ;;  %s830_s2 = inlined_call_operand.vmem [shape: f32[1,128], index: 2, kind: input, shape index: {}]   ;;  %s831_s3 = inlined_call_operand.vmem [shape: f32[2,8,256], index: 3, kind: output, shape index: {}]  }
   0x1   :  { %s703_s14 = smov 0  }
   0x2 LB: > { %s25_s15 = sadd.s32 1, %s673_s13  ;;  %p541_p0 = scmp.ge.s32.totalorder %s677_s14, 1  ;;  %s677_s14 = sphi %s703_s14, %s13_s14   ;;  %s673_s13 = sphi %s701_s13, %s833_s13   ;;  %s669_s12 = sphi %s699_s12, %s832_s12  }
   0x3   : > { %p27_p1 = scmp.ge.s32.totalorder %s25_s15, 2  ;;  %p158_p2 = scmp.lt.s32.totalorder %s677_s14, 3 }
   0x5   : > { %s835_s15 = smov (%p27_p1, %s25_s15), 0  ;;  %p159_p3 = pnand %p541_p0, %p158_p2 }
   0x6   : > { %p191_p4 = scmp.lt.s32.totalorder (!%p159_p3), %s669_s12, 1  ;;  %v728_v0 = vld [vmem:[%s829_s1] ss:$0 sm:$0xff] (!%p159_p3) }
   0x7   : > { %162 = sbr.rel (%p159_p3) target bundleno = 157 (0x9d), region = 32  ;;  %v737_v9 = vld [vmem:[%s830_s2] ss:$0 sm:$0xff] (!%p159_p3) }
   0xe   : > { %s837_s12 = smov (!%p191_p4, %s669_s12), 1 }
   0xf   : > { %s550_s16 = sshll.u32 %s837_s12, 7  ;;  %s551_s24 = sshll.u32 %s837_s12, 4 }
  0x10   : > { %s723_s19 = scalar_lea.vmem %s828_s0, %s550_s16  ;;  %s208_s27 = scalar_lea.vmem %s831_s3, %s551_s24 }
  0x11   : > { %v623_v1 = vld [vmem:[%s723_s19 + $0x40] sm:$0xff]   ;;  %v624_v3 = vld [vmem:[%s723_s19 + $0x48] sm:$0xff]   ;;  %v625_v24 = vld [vmem:[%s723_s19 + $0x50] sm:$0xff]  }
  0x12   : > { %v553_v2 = vld [vmem:[%s723_s19] sm:$0xff]   ;;  %v586_v4 = vunpack.c.l.bf16 %v623_v1  ;;  %v587_v6 = vunpack.c.h.bf16 %v623_v1  ;;  %v616_v8 = vld [vmem:[%s723_s19 + $0x8] sm:$0xff]   ;;  %v590_v10 = vunpack.c.l.bf16 %v624_v3  ;;  %v591_v18 = vunpack.c.h.bf16 %v624_v3  ;;  %v617_v25 = vld [vmem:[%s723_s19 + $0x10] sm:$0xff]  }
  0x13   : > { %v554_v5 = vunpack.c.l.bf16 %v553_v2  ;;  %v555_v7 = vunpack.c.h.bf16 %v553_v2  ;;  %v558_v11 = vunpack.c.l.bf16 %v616_v8  ;;  %v559_v19 = vunpack.c.h.bf16 %v616_v8  ;;  %v626_v44 = vld [vmem:[%s723_s19 + $0x58] sm:$0xff]   ;;  %v627_v62 = vld [vmem:[%s723_s19 + $0x60] sm:$0xff]  }
  0x14   : > { %v297_v12 = vmul.f32 %v586_v4, %v728_v0  ;;  %v298_v14 = vmul.f32 %v587_v6, %v728_v0  ;;  %v299_v16 = vmul.f32 %v590_v10, %v728_v0  ;;  %v300_v30 = vmul.f32 %v591_v18, %v728_v0  ;;  %v618_v45 = vld [vmem:[%s723_s19 + $0x18] sm:$0xff]   ;;  %v619_v63 = vld [vmem:[%s723_s19 + $0x20] sm:$0xff]   ;;  %v628_v18 = vld [vmem:[%s723_s19 + $0x68] sm:$0xff]  }
  0x15   : > { %v281_v13 = vmul.f32 %v554_v5, %v728_v0  ;;  %v282_v15 = vmul.f32 %v555_v7, %v728_v0  ;;  %v283_v17 = vmul.f32 %v558_v11, %v728_v0  ;;  %v284_v31 = vmul.f32 %v559_v19, %v728_v0  ;;  %v620_v19 = vld [vmem:[%s723_s19 + $0x28] sm:$0xff]  }
  0x16   : > { %v336_v20 = vadd.f32 %v737_v9, %v297_v12  ;;  %v337_v22 = vadd.f32 %v737_v9, %v298_v14  ;;  %v338_v28 = vadd.f32 %v737_v9, %v299_v16  ;;  %v594_v34 = vunpack.c.l.bf16 %v625_v24 }
  0x17   : > { %v320_v21 = vadd.f32 %v737_v9, %v281_v13  ;;  %v321_v23 = vadd.f32 %v737_v9, %v282_v15  ;;  %v322_v29 = vadd.f32 %v737_v9, %v283_v17  ;;  %v562_v35 = vunpack.c.l.bf16 %v617_v25 }
  0x18   : > { %v368_v26 = vmax.f32 %v336_v20, 0.0  ;;  %v369_v32 = vmax.f32 %v337_v22, 0.0  ;;  %v370_v36 = vmax.f32 %v338_v28, 0.0  ;;  %v339_v37 = vadd.f32 %v737_v9, %v300_v30 }
  0x19   : > { %v352_v27 = vmax.f32 %v320_v21, 0.0  ;;  %v353_v33 = vmax.f32 %v321_v23, 0.0  ;;  %v323_v38 = vadd.f32 %v737_v9, %v284_v31  ;;  %v595_v39 = vunpack.c.h.bf16 %v625_v24 }
  0x1a   : > { %416 = vxpose.xlu1.b32.start [1/16] (narrow) %v368_v26, 8  ;;  %v354_v40 = vmax.f32 %v322_v29, 0.0  ;;  %v301_v41 = vmul.f32 %v594_v34, %v728_v0  ;;  %v285_v42 = vmul.f32 %v562_v35, %v728_v0  ;;  %v563_v43 = vunpack.c.h.bf16 %v617_v25 }
  0x1b   : > { %384 = vxpose.xlu0.b32.start [1/16] (narrow) %v352_v27, 8  ;;  %v371_v46 = vmax.f32 %v339_v37, 0.0  ;;  %v302_v47 = vmul.f32 %v595_v39, %v728_v0  ;;  %v598_v48 = vunpack.c.l.bf16 %v626_v44  ;;  %v566_v49 = vunpack.c.l.bf16 %v618_v45  ;;  %v621_v37 = vld [vmem:[%s723_s19 + $0x30] sm:$0xff]  }
  0x1c   : > { %v355_v50 = vmax.f32 %v323_v38, 0.0  ;;  %v340_v51 = vadd.f32 %v737_v9, %v301_v41  ;;  %v324_v52 = vadd.f32 %v737_v9, %v285_v42  ;;  %v286_v53 = vmul.f32 %v563_v43, %v728_v0 }
  0x1d   : > { %v303_v54 = vmul.f32 %v598_v48, %v728_v0  ;;  %v287_v55 = vmul.f32 %v566_v49, %v728_v0  ;;  %v599_v56 = vunpack.c.h.bf16 %v626_v44  ;;  %v567_v57 = vunpack.c.h.bf16 %v618_v45 }
  0x1e   : > { %417 = vxpose.xlu1.b32.cont [2/16] (narrow) %v369_v32, 8  ;;  %v372_v58 = vmax.f32 %v340_v51, 0.0  ;;  %v356_v59 = vmax.f32 %v324_v52, 0.0  ;;  %v341_v60 = vadd.f32 %v737_v9, %v302_v47  ;;  %v325_v61 = vadd.f32 %v737_v9, %v286_v53 }
  0x1f   : > { %385 = vxpose.xlu0.b32.cont [2/16] (narrow) %v353_v33, 8  ;;  %v342_v1 = vadd.f32 %v737_v9, %v303_v54  ;;  %v304_v2 = vmul.f32 %v599_v56, %v728_v0  ;;  %v288_v3 = vmul.f32 %v567_v57, %v728_v0  ;;  %v602_v4 = vunpack.c.l.bf16 %v627_v62  ;;  %v630_v54 = vld [vmem:[%s723_s19 + $0x78] sm:$0xff]  }
  0x20   : > { %v373_v5 = vmax.f32 %v341_v60, 0.0  ;;  %v357_v6 = vmax.f32 %v325_v61, 0.0  ;;  %v326_v7 = vadd.f32 %v737_v9, %v287_v55  ;;  %v570_v8 = vunpack.c.l.bf16 %v619_v63  ;;  %v622_v55 = vld [vmem:[%s723_s19 + $0x38] sm:$0xff]  }
  0x21   : > { %v374_v10 = vmax.f32 %v342_v1, 0.0  ;;  %v343_v11 = vadd.f32 %v737_v9, %v304_v2  ;;  %v327_v12 = vadd.f32 %v737_v9, %v288_v3  ;;  %v305_v13 = vmul.f32 %v602_v4, %v728_v0 }
  0x22   : > { %418 = vxpose.xlu1.b32.cont [3/16] (narrow) %v370_v36, 8  ;;  %v358_v14 = vmax.f32 %v326_v7, 0.0  ;;  %v289_v15 = vmul.f32 %v570_v8, %v728_v0  ;;  %v603_v16 = vunpack.c.h.bf16 %v627_v62  ;;  %v571_v17 = vunpack.c.h.bf16 %v619_v63  ;;  %v629_v36 = vld [vmem:[%s723_s19 + $0x70] sm:$0xff]  }
  0x23   : > { %386 = vxpose.xlu0.b32.cont [3/16] (narrow) %v354_v40, 8  ;;  %v375_v20 = vmax.f32 %v343_v11, 0.0  ;;  %v344_v21 = vadd.f32 %v737_v9, %v305_v13  ;;  %v606_v22 = vunpack.c.l.bf16 %v628_v18  ;;  %v574_v23 = vunpack.c.l.bf16 %v620_v19 }
  0x24   : > { %v359_v24 = vmax.f32 %v327_v12, 0.0  ;;  %v328_v25 = vadd.f32 %v737_v9, %v289_v15  ;;  %v306_v26 = vmul.f32 %v603_v16, %v728_v0  ;;  %v290_v27 = vmul.f32 %v571_v17, %v728_v0 }
  0x25   : > { %v307_v28 = vmul.f32 %v606_v22, %v728_v0  ;;  %v291_v29 = vmul.f32 %v574_v23, %v728_v0  ;;  %v607_v30 = vunpack.c.h.bf16 %v628_v18  ;;  %v575_v31 = vunpack.c.h.bf16 %v620_v19 }
  0x26   : > { %419 = vxpose.xlu1.b32.cont [4/16] (narrow) %v371_v46, 8  ;;  %v376_v32 = vmax.f32 %v344_v21, 0.0  ;;  %v360_v33 = vmax.f32 %v328_v25, 0.0  ;;  %v345_v34 = vadd.f32 %v737_v9, %v306_v26  ;;  %v329_v35 = vadd.f32 %v737_v9, %v290_v27 }
  0x27   : > { %387 = vxpose.xlu0.b32.cont [4/16] (narrow) %v355_v50, 8  ;;  %v346_v38 = vadd.f32 %v737_v9, %v307_v28  ;;  %v308_v39 = vmul.f32 %v607_v30, %v728_v0  ;;  %v292_v40 = vmul.f32 %v575_v31, %v728_v0  ;;  %v610_v41 = vunpack.c.l.bf16 %v629_v36 }
  0x28   : > { %v377_v42 = vmax.f32 %v345_v34, 0.0  ;;  %v361_v43 = vmax.f32 %v329_v35, 0.0  ;;  %v330_v44 = vadd.f32 %v737_v9, %v291_v29  ;;  %v578_v45 = vunpack.c.l.bf16 %v621_v37 }
  0x29   : > { %v378_v46 = vmax.f32 %v346_v38, 0.0  ;;  %v347_v47 = vadd.f32 %v737_v9, %v308_v39  ;;  %v331_v48 = vadd.f32 %v737_v9, %v292_v40  ;;  %v309_v49 = vmul.f32 %v610_v41, %v728_v0 }
  0x2a   : > { %420 = vxpose.xlu1.b32.cont [5/16] (narrow) %v372_v58, 8  ;;  %v362_v50 = vmax.f32 %v330_v44, 0.0  ;;  %v293_v51 = vmul.f32 %v578_v45, %v728_v0  ;;  %v611_v52 = vunpack.c.h.bf16 %v629_v36  ;;  %v579_v53 = vunpack.c.h.bf16 %v621_v37 }
  0x2b   : > { %388 = vxpose.xlu0.b32.cont [5/16] (narrow) %v356_v59, 8  ;;  %v379_v56 = vmax.f32 %v347_v47, 0.0  ;;  %v348_v57 = vadd.f32 %v737_v9, %v309_v49  ;;  %v614_v58 = vunpack.c.l.bf16 %v630_v54  ;;  %v582_v59 = vunpack.c.l.bf16 %v622_v55 }
  0x2c   : > { %v363_v60 = vmax.f32 %v331_v48, 0.0  ;;  %v332_v61 = vadd.f32 %v737_v9, %v293_v51  ;;  %v310_v62 = vmul.f32 %v611_v52, %v728_v0  ;;  %v294_v63 = vmul.f32 %v579_v53, %v728_v0 }
  0x2d   : > { %v311_v1 = vmul.f32 %v614_v58, %v728_v0  ;;  %v295_v2 = vmul.f32 %v582_v59, %v728_v0  ;;  %v615_v3 = vunpack.c.h.bf16 %v630_v54  ;;  %v583_v4 = vunpack.c.h.bf16 %v622_v55 }
  0x2e   : > { %421 = vxpose.xlu1.b32.cont [6/16] (narrow) %v373_v5, 8  ;;  %v380_v5 = vmax.f32 %v348_v57, 0.0  ;;  %v349_v7 = vadd.f32 %v737_v9, %v310_v62  ;;  %v333_v8 = vadd.f32 %v737_v9, %v294_v63 }
  0x2f   : > { %389 = vxpose.xlu0.b32.cont [6/16] (narrow) %v357_v6, 8  ;;  %v364_v6 = vmax.f32 %v332_v61, 0.0  ;;  %v296_v11 = vmul.f32 %v583_v4, %v728_v0  ;;  %v334_v15 = vadd.f32 %v737_v9, %v295_v2 }
  0x30   : > { %v381_v12 = vmax.f32 %v349_v7, 0.0  ;;  %v365_v13 = vmax.f32 %v333_v8, 0.0 }
  0x31   : > { %v366_v17 = vmax.f32 %v334_v15, 0.0  ;;  %v335_v19 = vadd.f32 %v737_v9, %v296_v11 }
  0x32   : > { %422 = vxpose.xlu1.b32.cont [7/16] (narrow) %v374_v10, 8  ;;  %v312_v10 = vmul.f32 %v615_v3, %v728_v0 }
  0x33   : > { %390 = vxpose.xlu0.b32.cont [7/16] (narrow) %v358_v14, 8  ;;  %v350_v14 = vadd.f32 %v737_v9, %v311_v1 }
  0x34   : > { %v351_v18 = vadd.f32 %v737_v9, %v312_v10 }
  0x35   : > { %v382_v16 = vmax.f32 %v350_v14, 0.0 }
  0x36   : > { %423 = vxpose.xlu1.b32.cont [8/16] (narrow) %v375_v20, 8  ;;  %v383_v0 = vmax.f32 %v351_v18, 0.0  ;;  %v367_v20 = vmax.f32 %v335_v19, 0.0 }
  0x37   : > { %391 = vxpose.xlu0.b32.cont [8/16] (narrow) %v359_v24, 8 }
  0x3a   : > { %424 = vxpose.xlu1.b32.cont [9/16] (narrow) %v376_v32, 8 }
  0x3b   : > { %392 = vxpose.xlu0.b32.cont [9/16] (narrow) %v360_v33, 8 }
  0x3e   : > { %425 = vxpose.xlu1.b32.cont [10/16] (narrow) %v377_v42, 8 }
  0x3f   : > { %393 = vxpose.xlu0.b32.cont [10/16] (narrow) %v361_v43, 8 }
  0x42   : > { %426 = vxpose.xlu1.b32.cont [11/16] (narrow) %v378_v46, 8 }
  0x43   : > { %394 = vxpose.xlu0.b32.cont [11/16] (narrow) %v362_v50, 8 }
  0x46   : > { %427 = vxpose.xlu1.b32.cont [12/16] (narrow) %v379_v56, 8 }
  0x47   : > { %395 = vxpose.xlu0.b32.cont [12/16] (narrow) %v363_v60, 8 }
  0x4a   : > { %428 = vxpose.xlu1.b32.cont [13/16] (narrow) %v380_v5, 8 }
  0x4b   : > { %396 = vxpose.xlu0.b32.cont [13/16] (narrow) %v364_v6, 8 }
  0x4e   : > { %429 = vxpose.xlu1.b32.cont [14/16] (narrow) %v381_v12, 8 }
  0x4f   : > { %397 = vxpose.xlu0.b32.cont [14/16] (narrow) %v365_v13, 8 }
  0x52   : > { %430 = vxpose.xlu1.b32.cont [15/16] (narrow) %v382_v16, 8 }
  0x53   : > { %398 = vxpose.xlu0.b32.cont [15/16] (narrow) %v366_v17, 8 }
  0x56   : > { %431 = vxpose.xlu1.b32.end [16/16] (narrow) %v383_v0, 8 }
  0x57   : > { %399 = vxpose.xlu0.b32.end [16/16] (narrow) %v367_v20, 8 }
  0x9a   : > { %v432_v21 = vpop.trf.xlu1 }
  0x9b   : > { %v400_v22 = vpop.trf.xlu0  ;;  %449 = vst [vmem:[%s208_s27 + $0x8] sm:$0xff] %v432_v21 }
  0x9c   : > { %448 = vst [vmem:[%s208_s27] sm:$0xff] %v400_v22 }
  0x9d PF: > { %s13_s14 = sadd.s32 1, %s677_s14   ;;  %s832_s12 = smov %s673_s13 }
  0x9e   : > { %p10_p5 = scmp.ge.s32.totalorder %s13_s14, 4   ;;  %s833_s13 = smov %s835_s15 }
  0xa0   :  { %12 = sbr.rel (!%p10_p5) target bundleno = 2 (0x2), region = 62 }

// kernel: conv_block_forward.2
= control target key start
LH: loop header
LB: loop body
LE: loop exit
PB: predicated region body
PF: predicated region fallthrough
CT: control target
= control target key end

     0   :  { %s2613_s15 = smov 0   ;;  %s2615_s16 = smov 0   ;;  %s2802_s0 = inlined_call_operand.vmem [shape: bf16[2,288,12], index: 0, kind: input, shape index: {}]   ;;  %s2803_s1 = inlined_call_operand.vmem [shape: bf16[3,12,128], index: 1, kind: input, shape index: {}]   ;;  %s2804_s2 = inlined_call_operand.vmem [shape: bf16[2,256,128], index: 2, kind: output, shape index: {0}]   ;;  %s2805_s3 = inlined_call_operand.vmem [shape: f32[2,1,128], index: 3, kind: output, shape index: {1}]   ;;  %s2806_s4 = inlined_call_operand.vmem [shape: f32[2,1,128], index: 4, kind: output, shape index: {2}]  }
   0x1   :  { %s2617_s17 = smov 0  }
   0x2 LB: > { %s27_s18 = sadd.s32 1, %s2582_s16  ;;  %p1932_p0 = scmp.ge.s32.totalorder %s2586_s17, 1  ;;  %s2586_s17 = sphi %s2617_s17, %s15_s17   ;;  %s2582_s16 = sphi %s2615_s16, %s2808_s16   ;;  %s2578_s15 = sphi %s2613_s15, %s2807_s15  }
   0x3   : > { %p29_p1 = scmp.ge.s32.totalorder %s27_s18, 2  ;;  %p185_p2 = scmp.lt.s32.totalorder %s2586_s17, 3 }
   0x5   : > { %s2810_s18 = smov (%p29_p1, %s27_s18), 0  ;;  %p186_p3 = pnand %p1932_p0, %p185_p2 }
   0x6   : > { %v2513_v0 = vld [vmem:[%s2803_s1] sm:$0x3f] (!%p186_p3)   ;;  %vm422_vm0 = vcmask (!%p186_p3), 1045504   ;;  %p223_p4 = scmp.lt.s32.totalorder (!%p186_p3), %s2578_s15, 1  ;;  %v2514_v1 = vld [vmem:[%s2803_s1 + $0x8] sm:$0x3f] (!%p186_p3)  }
   0x7   : > { %189 = sbr.rel (%p186_p3) target bundleno = 346 (0x15a), region = 28  ;;  %2484 = vmatprep.subr.msk.bf16.mxu1 (!%p186_p3), %vm422_vm0, %v2513_v0  ;;  %v424_v2 = vsel (!%p186_p3), %vm422_vm0, %v2513_v0, 0  ;;  %v2517_v3 = vld [vmem:[%s2803_s1 + $0x10] sm:$0x3f] (!%p186_p3)   ;;  %2485 = vmatprep.subr.msk.bf16.mxu0 (!%p186_p3), %vm422_vm0, %v2514_v1  ;;  %v793_v4 = vsel (!%p186_p3), %vm422_vm0, %v2514_v1, 0  ;;  %vm373_vm1 = vcmask (!%p186_p3), 97280  }
   0x8   : > { %2317 = vmatpush3.bf16.msra.mxu1 (!%p186_p3), %v424_v2  ;;  %2351 = vmatpush3.bf16.msra.mxu0 (!%p186_p3), %v793_v4  ;;  %v1226_v9 = vsel (!%p186_p3), %vm422_vm0, %v2517_v3, 0 }
   0x9   : > { %2486 = vmatprep.subr.msk.bf16.mxu1 (!%p186_p3), %vm422_vm0, %v2514_v1  ;;  %2487 = vmatprep.subr.msk.bf16.mxu0 (!%p186_p3), %vm422_vm0, %v2517_v3 }
   0xe   : > { %s2812_s15 = smov (!%p223_p4, %s2578_s15), 1 }
   0xf   : > { %s2488_s25 = smul.u32 144, %s2812_s15  ;;  %s2137_s29 = sshll.u32 %s2812_s15, 7 }
  0x10   : > { %s2763_s6 = scalar_lea.vmem %s2804_s2, %s2137_s29  ;;  %s241_s9 = scalar_lea.vmem %s2805_s3, %s2812_s15 }
  0x11   : > { %s2652_s28 = scalar_lea.vmem %s2802_s0, %s2488_s25  ;;  %s246_s12 = scalar_lea.vmem %s2806_s4, %s2812_s15 }
  0x12   : > { %v2515_v5 = vld [vmem:[%s2652_s28] sm:$0xff]   ;;  %v2516_v6 = vld [vmem:[%s2652_s28 + $0x8] sm:$0xff]   ;;  %v2519_v8 = vld [vmem:[%s2652_s28 + $0x10] sm:$0xff]  }
  0x13   : > { %2318 = vmatprep.mubr.msk.bf16.mxu1 %vm373_vm1, %v2515_v5  ;;  %v2518_v7 = vld [vmem:[%s2652_s28 + $0x8] sm:$0xff]   ;;  %2352 = vmatprep.mubr.msk.bf16.mxu0 %vm373_vm1, %v2516_v6  ;;  %v2520_v10 = vld [vmem:[%s2652_s28 + $0x10] sm:$0xff]   ;;  %v2521_v11 = vld [vmem:[%s2652_s28 + $0x18] sm:$0xff]  }
  0x14   : > { %2319 = vmatmul.mubr.msk.bf16.vlgmr.msra.gmra.mrb[0].mxu1 %vm373_vm1, %v2518_v7  ;;  %2353 = vmatmul.mubr.msk.bf16.vlgmr.msra.gmra.mrb[0].mxu0 %vm373_vm1, %v2519_v8  ;;  %v2522_v12 = vld [vmem:[%s2652_s28 + $0x18] sm:$0xff]   ;;  %v2523_v13 = vld [vmem:[%s2652_s28 + $0x20] sm:$0xff]   ;;  %v2525_v15 = vld [vmem:[%s2652_s28 + $0x28] sm:$0xff]  }
  0x15   : > { %2419 = vmatpush3.bf16.msra.mxu1 %v793_v4  ;;  %2385 = vmatpush3.bf16.msra.mxu0 %v1226_v9  ;;  %v2524_v14 = vld [vmem:[%s2652_s28 + $0x20] sm:$0xff]   ;;  %v2526_v16 = vld [vmem:[%s2652_s28 + $0x28] sm:$0xff]   ;;  %v2527_v17 = vld [vmem:[%s2652_s28 + $0x30] sm:$0xff]  }
  0x16   : > { %2322 = vmatprep.mubr.msk.bf16.mxu1 %vm373_vm1, %v2520_v10  ;;  %2356 = vmatprep.mubr.msk.bf16.mxu0 %vm373_vm1, %v2521_v11  ;;  %v2528_v18 = vld [vmem:[%s2652_s28 + $0x30] sm:$0xff]   ;;  %v2529_v19 = vld [vmem:[%s2652_s28 + $0x38] sm:$0xff]   ;;  %v2531_v21 = vld [vmem:[%s2652_s28 + $0x40] sm:$0xff]  }
  0x17   : > { %v2530_v20 = vld [vmem:[%s2652_s28 + $0x38] sm:$0xff]   ;;  %v2532_v22 = vld [vmem:[%s2652_s28 + $0x40] sm:$0xff]   ;;  %v2533_v23 = vld [vmem:[%s2652_s28 + $0x10] sm:$0xff]  }
  0x18   : > { %v2534_v24 = vld [vmem:[%s2652_s28 + $0x48] sm:$0xff]   ;;  %v2535_v25 = vld [vmem:[%s2652_s28 + $0x18] sm:$0xff]   ;;  %v2536_v26 = vld [vmem:[%s2652_s28 + $0x50] sm:$0xff]  }
  0x19   : > { %v2537_v27 = vld [vmem:[%s2652_s28 + $0x20] sm:$0xff]   ;;  %v2538_v28 = vld [vmem:[%s2652_s28 + $0x58] sm:$0xff]   ;;  %v2539_v29 = vld [vmem:[%s2652_s28 + $0x28] sm:$0xff]  }
  0x1a   : > { %v2540_v30 = vld [vmem:[%s2652_s28 + $0x60] sm:$0xff]   ;;  %v2541_v31 = vld [vmem:[%s2652_s28 + $0x30] sm:$0xff]   ;;  %v2542_v32 = vld [vmem:[%s2652_s28 + $0x68] sm:$0xff]  }
  0x1b   : > { %v2543_v33 = vld [vmem:[%s2652_s28 + $0x38] sm:$0xff]   ;;  %v2544_v34 = vld [vmem:[%s2652_s28 + $0x70] sm:$0xff]   ;;  %v2545_v35 = vld [vmem:[%s2652_s28 + $0x40] sm:$0xff]  }
  0x1c   : > { %2323 = vmatmul.mubr.msk.bf16.gmra.mrb[4].mxu1 %vm373_vm1, %v2522_v12  ;;  %2357 = vmatmul.mubr.msk.bf16.gmra.mrb[4].mxu0 %vm373_vm1, %v2523_v13  ;;  %v2546_v36 = vld [vmem:[%s2652_s28 + $0x78] sm:$0xff]   ;;  %v2547_v37 = vld [vmem:[%s2652_s28 + $0x48] sm:$0xff]   ;;  %v2549_v39 = vld [vmem:[%s2652_s28 + $0x50] sm:$0xff]  }
  0x1d   : > { %2326 = vmatprep.mubr.msk.bf16.mxu1 %vm373_vm1, %v2524_v14  ;;  %2360 = vmatprep.mubr.msk.bf16.mxu0 %vm373_vm1, %v2525_v15  ;;  %v2548_v38 = vld [vmem:[%s2652_s28 + $0x48] sm:$0xff]   ;;  %v2550_v40 = vld [vmem:[%s2652_s28 + $0x50] sm:$0xff]   ;;  %v2551_v41 = vld [vmem:[%s2652_s28 + $0x58] sm:$0xff]  }
  0x1e   : > { %v2552_v42 = vld [vmem:[%s2652_s28 + $0x58] sm:$0xff]   ;;  %v2553_v43 = vld [vmem:[%s2652_s28 + $0x60] sm:$0xff]   ;;  %v2555_v45 = vld [vmem:[%s2652_s28 + $0x68] sm:$0xff]  }
  0x1f   : > { %v2554_v44 = vld [vmem:[%s2652_s28 + $0x60] sm:$0xff]   ;;  %v2556_v46 = vld [vmem:[%s2652_s28 + $0x68] sm:$0xff]   ;;  %v2557_v47 = vld [vmem:[%s2652_s28 + $0x70] sm:$0xff]  }
  0x20   : > { %v2558_v48 = vld [vmem:[%s2652_s28 + $0x70] sm:$0xff]   ;;  %v2559_v49 = vld [vmem:[%s2652_s28 + $0x78] sm:$0xff]   ;;  %v2561_v51 = vld [vmem:[%s2652_s28 + $0x80] sm:$0xff]  }
  0x21   : > { %v2560_v50 = vld [vmem:[%s2652_s28 + $0x78] sm:$0xff]   ;;  %v2562_v52 = vld [vmem:[%s2652_s28 + $0x80] sm:$0xff]   ;;  %v2563_v53 = vld [vmem:[%s2652_s28 + $0x88] sm:$0xff]  }
  0x24   : > { %2327 = vmatmul.mubr.msk.bf16.gmra.mrb[8].mxu1 %vm373_vm1, %v2526_v16  ;;  %2361 = vmatmul.mubr.msk.bf16.gmra.mrb[8].mxu0 %vm373_vm1, %v2527_v17 }
  0x25   : > { %2330 = vmatprep.mubr.msk.bf16.mxu1 %vm373_vm1, %v2528_v18  ;;  %2364 = vmatprep.mubr.msk.bf16.mxu0 %vm373_vm1, %v2529_v19 }
  0x2c   : > { %2331 = vmatmul.mubr.msk.bf16.gmra.mrb[12].mxu1 %vm373_vm1, %v2530_v20  ;;  %2365 = vmatmul.mubr.msk.bf16.gmra.mrb[12].mxu0 %vm373_vm1, %v2531_v21 }
  0x2d   : > { %2334 = vmatprep.mubr.msk.bf16.mxu1 %vm373_vm1, %v2532_v22  ;;  %2386 = vmatprep.mubr.msk.bf16.mxu0 %vm373_vm1, %v2533_v23 }
  0x34   : > { %2335 = vmatmul.mubr.msk.bf16.gmra.mrb[16].mxu1 %vm373_vm1, %v2534_v24  ;;  %2387 = vmatmul.mubr.msk.bf16.vlgmr.msra.gmra.mrb[0].mxu0 %vm373_vm1, %v2535_v25 }
  0x35   : > { %2338 = vmatprep.mubr.msk.bf16.mxu1 %vm373_vm1, %v2536_v26  ;;  %2390 = vmatprep.mubr.msk.bf16.mxu0 %vm373_vm1, %v2537_v27 }
  0x3c   : > { %2339 = vmatmul.mubr.msk.bf16.gmra.mrb[20].mxu1 %vm373_vm1, %v2538_v28  ;;  %2391 = vmatmul.mubr.msk.bf16.gmra.mrb[4].mxu0 %vm373_vm1, %v2539_v29 }
  0x3d   : > { %2342 = vmatprep.mubr.msk.bf16.mxu1 %vm373_vm1, %v2540_v30  ;;  %2394 = vmatprep.mubr.msk.bf16.mxu0 %vm373_vm1, %v2541_v31 }
  0x44   : > { %2343 = vmatmul.mubr.msk.bf16.gmra.mrb[24].mxu1 %vm373_vm1, %v2542_v32  ;;  %2395 = vmatmul.mubr.msk.bf16.gmra.mrb[8].mxu0 %vm373_vm1, %v2543_v33 }
  0x45   : > { %2346 = vmatprep.mubr.msk.bf16.mxu1 %vm373_vm1, %v2544_v34  ;;  %2398 = vmatprep.mubr.msk.bf16.mxu0 %vm373_vm1, %v2545_v35 }
  0x4c   : > { %2347 = vmatmul.mubr.msk.bf16.gmra.mrb[28].mxu1 %vm373_vm1, %v2546_v36  ;;  %2399 = vmatmul.mubr.msk.bf16.gmra.mrb[12].mxu0 %vm373_vm1, %v2547_v37 }
  0x4d   : > { %2368 = vmatprep.mubr.msk.bf16.mxu1 %vm373_vm1, %v2548_v38  ;;  %2402 = vmatprep.mubr.msk.bf16.mxu0 %vm373_vm1, %v2549_v39 }
  0x54   : > { %2369 = vmatmul.mubr.msk.bf16.vlgmr.msra.gmra.mrb[16].mxu1 %vm373_vm1, %v2550_v40  ;;  %2403 = vmatmul.mubr.msk.bf16.gmra.mrb[16].mxu0 %vm373_vm1, %v2551_v41 }
  0x55   : > { %2372 = vmatprep.mubr.msk.bf16.mxu1 %vm373_vm1, %v2552_v42  ;;  %2406 = vmatprep.mubr.msk.bf16.mxu0 %vm373_vm1, %v2553_v43 }
  0x5c   : > { %2373 = vmatmul.mubr.msk.bf16.gmra.mrb[20].mxu1 %vm373_vm1, %v2554_v44  ;;  %2407 = vmatmul.mubr.msk.bf16.gmra.mrb[20].mxu0 %vm373_vm1, %v2555_v45 }
  0x5d   : > { %2376 = vmatprep.mubr.msk.bf16.mxu1 %vm373_vm1, %v2556_v46  ;;  %2410 = vmatprep.mubr.msk.bf16.mxu0 %vm373_vm1, %v2557_v47 }
  0x64   : > { %2377 = vmatmul.mubr.msk.bf16.gmra.mrb[24].mxu1 %vm373_vm1, %v2558_v48  ;;  %2411 = vmatmul.mubr.msk.bf16.gmra.mrb[24].mxu0 %vm373_vm1, %v2559_v49 }
  0x65   : > { %2380 = vmatprep.mubr.msk.bf16.mxu1 %vm373_vm1, %v2560_v50  ;;  %2414 = vmatprep.mubr.msk.bf16.mxu0 %vm373_vm1, %v2561_v51 }
  0x6c   : > { %2381 = vmatmul.mubr.msk.bf16.gmra.mrb[28].mxu1 %vm373_vm1, %v2562_v52  ;;  %2415 = vmatmul.mubr.msk.bf16.gmra.mrb[28].mxu0 %vm373_vm1, %v2563_v53 }
  0xe7   : > { %v2320_v54 = vpop.f32.mrb[0].mxu1 }
  0xe8   : > { %v460_v55 = vpop.f32.mrb[1].mxu1 }
  0xe9   : > { %v2321_v56 = vpop.f32.mrb[2].mxu1 }
  0xea   : > { %v463_v57 = vpop.f32.mrb[3].mxu1 }
  0xef   : > { %v2324_v58 = vpop.f32.mrb[4].mxu1 }
  0xf0   : > { %v476_v59 = vpop.f32.mrb[5].mxu1 }
  0xf1   : > { %v2325_v60 = vpop.f32.mrb[6].mxu1 }
  0xf2   : > { %v479_v61 = vpop.f32.mrb[7].mxu1 }
  0xf7   : > { %v2328_v62 = vpop.f32.mrb[8].mxu1 }
  0xf8   : > { %v492_v63 = vpop.f32.mrb[9].mxu1 }
  0xf9   : > { %v2329_v0 = vpop.f32.mrb[10].mxu1 }
  0xfa   : > { %v495_v1 = vpop.f32.mrb[11].mxu1 }
  0xff   : > { %v2751_v2 = vpop.f32.mrb[12].mxu1 }
 0x100   : > { %v2753_v3 = vpop.f32.mrb[13].mxu1 }
 0x101   : > { %v2755_v4 = vpop.f32.mrb[14].mxu1 }
 0x102   : > { %v2757_v5 = vpop.f32.mrb[15].mxu1 }
 0x107   : > { %v2388_v6 = vpop.f32.mrb[0].mxu0 }
 0x108   : > { %v2420_v7 = vadd.f32 %v2388_v6, %v2320_v54  ;;  %v1262_v8 = vpop.f32.mrb[1].mxu0 }
 0x109   : > { %v2421_v9 = vadd.f32 %v1262_v8, %v460_v55  ;;  %v2389_v10 = vpop.f32.mrb[2].mxu0 }
 0x10a   : > { %v2422_v11 = vadd.f32 %v2389_v10, %v2321_v56  ;;  %v1265_v12 = vpop.f32.mrb[3].mxu0  ;;  %v1717_v19 = vmul.f32 %v2420_v7, %v2420_v7 }
 0x10b   : > { %v2423_v13 = vadd.f32 %v1265_v12, %v463_v57  ;;  %v1715_v15 = vmul.f32 %v2421_v9, %v2421_v9 }
 0x10c   : > { %v2178_v14 = vpack.c.bf16 %v2422_v11, %v2420_v7  ;;  %v1718_v25 = vmul.f32 %v2422_v11, %v2422_v11 }
 0x10d   : > { %v2173_v16 = vpack.c.bf16 %v2423_v13, %v2421_v9  ;;  %v1677_v17 = vadd.f32 %v2423_v13, %v2421_v9  ;;  %v1716_v18 = vmul.f32 %v2423_v13, %v2423_v13 }
 0x10e   : > { %2250 = vst [vmem:[%s2763_s6 + $0x8] sm:$0xff] %v2178_v14  }
 0x10f   : > { %2174 = vst [vmem:[%s2763_s6] sm:$0xff] %v2173_v16   ;;  %v1678_v20 = vadd.f32 %v2420_v7, %v1677_v17  ;;  %v1747_v21 = vadd.f32 %v1716_v18, %v1715_v15  ;;  %v2392_v22 = vpop.f32.mrb[4].mxu0 }
 0x110   : > { %v2424_v23 = vadd.f32 %v2392_v22, %v2324_v58  ;;  %v1278_v24 = vpop.f32.mrb[5].mxu0 }
 0x111   : > { %v1748_v26 = vadd.f32 %v1747_v21, %v1717_v19  ;;  %v2425_v27 = vadd.f32 %v1278_v24, %v476_v59  ;;  %v1679_v28 = vadd.f32 %v2422_v11, %v1678_v20  ;;  %v2393_v29 = vpop.f32.mrb[6].mxu0 }
 0x112   : > { %v2426_v30 = vadd.f32 %v2393_v29, %v2325_v60  ;;  %v1281_v31 = vpop.f32.mrb[7].mxu0  ;;  %v1721_v41 = vmul.f32 %v2424_v23, %v2424_v23 }
 0x113   : > { %v1680_v32 = vadd.f32 %v2425_v27, %v1679_v28  ;;  %v1719_v33 = vmul.f32 %v2425_v27, %v2425_v27  ;;  %v1749_v34 = vadd.f32 %v1748_v26, %v1718_v25  ;;  %v2427_v35 = vadd.f32 %v1281_v31, %v479_v61 }
 0x114   : > { %v2188_v36 = vpack.c.bf16 %v2426_v30, %v2424_v23  ;;  %v1722_v47 = vmul.f32 %v2426_v30, %v2426_v30 }
 0x115   : > { %v1750_v37 = vadd.f32 %v1749_v34, %v1719_v33  ;;  %v2183_v38 = vpack.c.bf16 %v2427_v35, %v2425_v27  ;;  %v1681_v39 = vadd.f32 %v2427_v35, %v1680_v32  ;;  %v1720_v40 = vmul.f32 %v2427_v35, %v2427_v35 }
 0x116   : > { %2252 = vst [vmem:[%s2763_s6 + $0x18] sm:$0xff] %v2188_v36  }
 0x117   : > { %2251 = vst [vmem:[%s2763_s6 + $0x10] sm:$0xff] %v2183_v38   ;;  %v1682_v42 = vadd.f32 %v2424_v23, %v1681_v39  ;;  %v1751_v43 = vadd.f32 %v1750_v37, %v1720_v40  ;;  %v2396_v44 = vpop.f32.mrb[8].mxu0 }
 0x118   : > { %v2428_v45 = vadd.f32 %v2396_v44, %v2328_v62  ;;  %v1294_v46 = vpop.f32.mrb[9].mxu0 }
 0x119   : > { %v1752_v48 = vadd.f32 %v1751_v43, %v1721_v41  ;;  %v2429_v49 = vadd.f32 %v1294_v46, %v492_v63  ;;  %v1683_v50 = vadd.f32 %v2426_v30, %v1682_v42  ;;  %v2397_v51 = vpop.f32.mrb[10].mxu0 }
 0x11a   : > { %v2430_v52 = vadd.f32 %v2397_v51, %v2329_v0  ;;  %v1297_v53 = vpop.f32.mrb[11].mxu0  ;;  %v1725_v62 = vmul.f32 %v2428_v45, %v2428_v45 }
 0x11b   : > { %v1684_v54 = vadd.f32 %v2429_v49, %v1683_v50  ;;  %v1723_v55 = vmul.f32 %v2429_v49, %v2429_v49  ;;  %v1753_v56 = vadd.f32 %v1752_v48, %v1722_v47  ;;  %v2431_v57 = vadd.f32 %v1297_v53, %v495_v1 }
 0x11c   : > { %v2198_v58 = vpack.c.bf16 %v2430_v52, %v2428_v45  ;;  %v1726_v0 = vmul.f32 %v2430_v52, %v2430_v52 }
 0x11d   : > { %v1754_v59 = vadd.f32 %v1753_v56, %v1723_v55  ;;  %v2193_v60 = vpack.c.bf16 %v2431_v57, %v2429_v49  ;;  %v1685_v61 = vadd.f32 %v2431_v57, %v1684_v54  ;;  %v1724_v6 = vmul.f32 %v2431_v57, %v2431_v57 }
 0x11e   : > { %2254 = vst [vmem:[%s2763_s6 + $0x28] sm:$0xff] %v2198_v58  }
 0x11f   : > { %2253 = vst [vmem:[%s2763_s6 + $0x20] sm:$0xff] %v2193_v60   ;;  %v1686_v7 = vadd.f32 %v2428_v45, %v1685_v61  ;;  %v1755_v8 = vadd.f32 %v1754_v59, %v1724_v6  ;;  %v2400_v63 = vpop.f32.mrb[12].mxu0 }
 0x120   : > { %v2432_v9 = vadd.f32 %v2400_v63, %v2751_v2  ;;  %v1310_v10 = vpop.f32.mrb[13].mxu0 }
 0x121   : > { %v1756_v11 = vadd.f32 %v1755_v8, %v1725_v62  ;;  %v2433_v12 = vadd.f32 %v1310_v10, %v2753_v3  ;;  %v1687_v1 = vadd.f32 %v2430_v52, %v1686_v7  ;;  %v2401_v13 = vpop.f32.mrb[14].mxu0 }
 0x122   : > { %v2434_v14 = vadd.f32 %v2401_v13, %v2755_v4  ;;  %v1313_v15 = vpop.f32.mrb[15].mxu0  ;;  %v1729_v25 = vmul.f32 %v2432_v9, %v2432_v9 }
 0x123   : > { %v1688_v16 = vadd.f32 %v2433_v12, %v1687_v1  ;;  %v1727_v17 = vmul.f32 %v2433_v12, %v2433_v12  ;;  %v1757_v18 = vadd.f32 %v1756_v11, %v1726_v0  ;;  %v2435_v19 = vadd.f32 %v1313_v15, %v2757_v5 }
 0x124   : > { %v2208_v20 = vpack.c.bf16 %v2434_v14, %v2432_v9  ;;  %v1730_v31 = vmul.f32 %v2434_v14, %v2434_v14 }
 0x125   : > { %v1758_v21 = vadd.f32 %v1757_v18, %v1727_v17  ;;  %v2203_v2 = vpack.c.bf16 %v2435_v19, %v2433_v12  ;;  %v1689_v22 = vadd.f32 %v2435_v19, %v1688_v16  ;;  %v1728_v23 = vmul.f32 %v2435_v19, %v2435_v19 }
 0x126   : > { %2256 = vst [vmem:[%s2763_s6 + $0x38] sm:$0xff] %v2208_v20  }
 0x127   : > { %v2370_v24 = vpop.f32.mrb[16].mxu1  ;;  %2255 = vst [vmem:[%s2763_s6 + $0x30] sm:$0xff] %v2203_v2   ;;  %v1690_v3 = vadd.f32 %v2432_v9, %v1689_v22  ;;  %v1759_v26 = vadd.f32 %v1758_v21, %v1728_v23  ;;  %v2404_v27 = vpop.f32.mrb[16].mxu0 }
 0x128   : > { %v893_v28 = vpop.f32.mrb[17].mxu1  ;;  %v2436_v4 = vadd.f32 %v2404_v27, %v2370_v24  ;;  %v1326_v29 = vpop.f32.mrb[17].mxu0 }
 0x129   : > { %v2371_v30 = vpop.f32.mrb[18].mxu1  ;;  %v1760_v32 = vadd.f32 %v1759_v26, %v1729_v25  ;;  %v2437_v5 = vadd.f32 %v1326_v29, %v893_v28  ;;  %v1691_v33 = vadd.f32 %v2434_v14, %v1690_v3  ;;  %v2405_v34 = vpop.f32.mrb[18].mxu0 }
 0x12a   : > { %v896_v35 = vpop.f32.mrb[19].mxu1  ;;  %v2438_v36 = vadd.f32 %v2405_v34, %v2371_v30  ;;  %v1329_v37 = vpop.f32.mrb[19].mxu0  ;;  %v1733_v48 = vmul.f32 %v2436_v4, %v2436_v4 }
 0x12b   : > { %v1692_v38 = vadd.f32 %v2437_v5, %v1691_v33  ;;  %v1731_v39 = vmul.f32 %v2437_v5, %v2437_v5  ;;  %v1761_v40 = vadd.f32 %v1760_v32, %v1730_v31  ;;  %v2439_v41 = vadd.f32 %v1329_v37, %v896_v35 }
 0x12c   : > { %v2218_v42 = vpack.c.bf16 %v2438_v36, %v2436_v4  ;;  %v1734_v56 = vmul.f32 %v2438_v36, %v2438_v36 }
 0x12d   : > { %v1762_v43 = vadd.f32 %v1761_v40, %v1731_v39  ;;  %v2213_v44 = vpack.c.bf16 %v2439_v41, %v2437_v5  ;;  %v1693_v45 = vadd.f32 %v2439_v41, %v1692_v38  ;;  %v1732_v46 = vmul.f32 %v2439_v41, %v2439_v41 }
 0x12e   : > { %2258 = vst [vmem:[%s2763_s6 + $0x48] sm:$0xff] %v2218_v42  }
 0x12f   : > { %v2374_v47 = vpop.f32.mrb[20].mxu1  ;;  %2257 = vst [vmem:[%s2763_s6 + $0x40] sm:$0xff] %v2213_v44   ;;  %v1694_v49 = vadd.f32 %v2436_v4, %v1693_v45  ;;  %v1763_v50 = vadd.f32 %v1762_v43, %v1732_v46  ;;  %v2408_v51 = vpop.f32.mrb[20].mxu0 }
 0x130   : > { %v909_v52 = vpop.f32.mrb[21].mxu1  ;;  %v2440_v53 = vadd.f32 %v2408_v51, %v2374_v47  ;;  %v1342_v54 = vpop.f32.mrb[21].mxu0 }
 0x131   : > { %v2375_v55 = vpop.f32.mrb[22].mxu1  ;;  %v1764_v57 = vadd.f32 %v1763_v50, %v1733_v48  ;;  %v2441_v58 = vadd.f32 %v1342_v54, %v909_v52  ;;  %v1695_v59 = vadd.f32 %v2438_v36, %v1694_v49  ;;  %v2409_v60 = vpop.f32.mrb[22].mxu0 }
 0x132   : > { %v912_v61 = vpop.f32.mrb[23].mxu1  ;;  %v2442_v6 = vadd.f32 %v2409_v60, %v2375_v55  ;;  %v1345_v62 = vpop.f32.mrb[23].mxu0  ;;  %v1737_v14 = vmul.f32 %v2440_v53, %v2440_v53 }
 0x133   : > { %v1696_v7 = vadd.f32 %v2441_v58, %v1695_v59  ;;  %v1735_v8 = vmul.f32 %v2441_v58, %v2441_v58  ;;  %v1765_v63 = vadd.f32 %v1764_v57, %v1734_v56  ;;  %v2443_v9 = vadd.f32 %v1345_v62, %v912_v61 }
 0x134   : > { %v2228_v10 = vpack.c.bf16 %v2442_v6, %v2440_v53  ;;  %v1738_v2 = vmul.f32 %v2442_v6, %v2442_v6 }
 0x135   : > { %v1766_v0 = vadd.f32 %v1765_v63, %v1735_v8  ;;  %v2223_v11 = vpack.c.bf16 %v2443_v9, %v2441_v58  ;;  %v1697_v12 = vadd.f32 %v2443_v9, %v1696_v7  ;;  %v1736_v1 = vmul.f32 %v2443_v9, %v2443_v9 }
 0x136   : > { %2260 = vst [vmem:[%s2763_s6 + $0x58] sm:$0xff] %v2228_v10  }
 0x137   : > { %v2378_v13 = vpop.f32.mrb[24].mxu1  ;;  %2259 = vst [vmem:[%s2763_s6 + $0x50] sm:$0xff] %v2223_v11   ;;  %v1698_v15 = vadd.f32 %v2440_v53, %v1697_v12  ;;  %v1767_v16 = vadd.f32 %v1766_v0, %v1736_v1  ;;  %v2412_v17 = vpop.f32.mrb[24].mxu0 }
 0x138   : > { %v925_v18 = vpop.f32.mrb[25].mxu1  ;;  %v2444_v19 = vadd.f32 %v2412_v17, %v2378_v13  ;;  %v1358_v20 = vpop.f32.mrb[25].mxu0 }
 0x139   : > { %v2379_v21 = vpop.f32.mrb[26].mxu1  ;;  %v1768_v22 = vadd.f32 %v1767_v16, %v1737_v14  ;;  %v2445_v23 = vadd.f32 %v1358_v20, %v925_v18  ;;  %v1699_v24 = vadd.f32 %v2442_v6, %v1698_v15  ;;  %v2413_v25 = vpop.f32.mrb[26].mxu0 }
 0x13a   : > { %v928_v3 = vpop.f32.mrb[27].mxu1  ;;  %v2446_v26 = vadd.f32 %v2413_v25, %v2379_v21  ;;  %v1361_v27 = vpop.f32.mrb[27].mxu0  ;;  %v1741_v36 = vmul.f32 %v2444_v19, %v2444_v19 }
 0x13b   : > { %v1700_v28 = vadd.f32 %v2445_v23, %v1699_v24  ;;  %v1739_v4 = vmul.f32 %v2445_v23, %v2445_v23  ;;  %v1769_v29 = vadd.f32 %v1768_v22, %v1738_v2  ;;  %v2447_v30 = vadd.f32 %v1361_v27, %v928_v3 }
 0x13c   : > { %v2238_v31 = vpack.c.bf16 %v2446_v26, %v2444_v19  ;;  %v1742_v44 = vmul.f32 %v2446_v26, %v2446_v26 }
 0x13d   : > { %v1770_v32 = vadd.f32 %v1769_v29, %v1739_v4  ;;  %v2233_v5 = vpack.c.bf16 %v2447_v30, %v2445_v23  ;;  %v1701_v33 = vadd.f32 %v2447_v30, %v1700_v28  ;;  %v1740_v34 = vmul.f32 %v2447_v30, %v2447_v30 }
 0x13e   : > { %2262 = vst [vmem:[%s2763_s6 + $0x68] sm:$0xff] %v2238_v31  }
 0x13f   : > { %v2382_v35 = vpop.f32.mrb[28].mxu1  ;;  %2261 = vst [vmem:[%s2763_s6 + $0x60] sm:$0xff] %v2233_v5   ;;  %v1702_v37 = vadd.f32 %v2444_v19, %v1701_v33  ;;  %v1771_v38 = vadd.f32 %v1770_v32, %v1740_v34  ;;  %v2416_v39 = vpop.f32.mrb[28].mxu0 }
 0x140   : > { %v941_v40 = vpop.f32.mrb[29].mxu1  ;;  %v2448_v41 = vadd.f32 %v2416_v39, %v2382_v35  ;;  %v1374_v42 = vpop.f32.mrb[29].mxu0 }
 0x141   : > { %v2383_v43 = vpop.f32.mrb[30].mxu1  ;;  %v1772_v45 = vadd.f32 %v1771_v38, %v1741_v36  ;;  %v2449_v46 = vadd.f32 %v1374_v42, %v941_v40  ;;  %v1703_v47 = vadd.f32 %v2446_v26, %v1702_v37  ;;  %v2417_v48 = vpop.f32.mrb[30].mxu0 }
 0x142   : > { %v944_v49 = vpop.f32.mrb[31].mxu1  ;;  %v2450_v50 = vadd.f32 %v2417_v48, %v2383_v43  ;;  %v1377_v51 = vpop.f32.mrb[31].mxu0  ;;  %v1745_v61 = vmul.f32 %v2448_v41, %v2448_v41 }
 0x143   : > { %v1704_v52 = vadd.f32 %v2449_v46, %v1703_v47  ;;  %v1743_v53 = vmul.f32 %v2449_v46, %v2449_v46  ;;  %v1773_v54 = vadd.f32 %v1772_v45, %v1742_v44  ;;  %v2451_v55 = vadd.f32 %v1377_v51, %v944_v49 }
 0x144   : > { %v2248_v56 = vpack.c.bf16 %v2450_v50, %v2448_v41  ;;  %v1746_v7 = vmul.f32 %v2450_v50, %v2450_v50 }
 0x145   : > { %v1774_v57 = vadd.f32 %v1773_v54, %v1743_v53  ;;  %v2243_v58 = vpack.c.bf16 %v2451_v55, %v2449_v46  ;;  %v1705_v59 = vadd.f32 %v2451_v55, %v1704_v52  ;;  %v1744_v60 = vmul.f32 %v2451_v55, %v2451_v55 }
 0x146   : > { %2264 = vst [vmem:[%s2763_s6 + $0x78] sm:$0xff] %v2248_v56  }
 0x147   : > { %2263 = vst [vmem:[%s2763_s6 + $0x70] sm:$0xff] %v2243_v58   ;;  %v1706_v6 = vadd.f32 %v2448_v41, %v1705_v59  ;;  %v1775_v62 = vadd.f32 %v1774_v57, %v1744_v60 }
 0x149   : > { %v1707_v8 = vadd.f32 %v2450_v50, %v1706_v6  ;;  %v1776_v63 = vadd.f32 %v1775_v62, %v1745_v61 }
 0x14b   : > { %v1708_v9 = vrot.slane %v1707_v8, 4  ;;  %v1777_v10 = vadd.f32 %v1776_v63, %v1746_v7 }
 0x14d   : > { %v1709_v0 = vadd.f32 %v1708_v9, %v1707_v8  ;;  %v1778_v11 = vrot.slane %v1777_v10, 4 }
 0x14f   : > { %v1710_v12 = vrot.slane %v1709_v0, 2  ;;  %v1779_v1 = vadd.f32 %v1778_v11, %v1777_v10 }
 0x151   : > { %v1711_v13 = vadd.f32 %v1710_v12, %v1709_v0  ;;  %v1780_v14 = vrot.slane %v1779_v1, 2 }
 0x153   : > { %v1712_v15 = vrot.slane %v1711_v13, 1  ;;  %v1781_v16 = vadd.f32 %v1780_v14, %v1779_v1 }
 0x155   : > { %v1713_v17 = vadd.f32 %v1712_v15, %v1711_v13  ;;  %v1782_v18 = vrot.slane %v1781_v16, 1 }
 0x157   : > { %1714 = vst [vmem:[%s241_s9] sm:$0x1] %v1713_v17  ;;  %v1783_v19 = vadd.f32 %v1782_v18, %v1781_v16 }
 0x159   : > { %1784 = vst [vmem:[%s246_s12] sm:$0x1] %v1783_v19 }
 0x15a PF: > { %s15_s17 = sadd.s32 1, %s2586_s17   ;;  %s2807_s15 = smov %s2582_s16 }
 0x15b   : > { %p12_p5 = scmp.ge.s32.totalorder %s15_s17, 4   ;;  %s2808_s16 = smov %s2810_s18 }
 0x15d   :  { %14 = sbr.rel (!%p12_p5) target bundleno = 2 (0x2), region = 87 }

</bundles_post_ra>
